<compile_context>
chip_gen: v7x
topology: tpu7x:2x2x1
jax: 0.10.0
libtpu: 0.0.40
codegen_flags: <defaults>
</compile_context>

<pallas_src>
import functools

import jax
import jax.numpy as jnp
from jax.experimental import pallas as pl
from jax.experimental.pallas import tpu as pltpu


def _round_up(x, m):
    return ((x + m - 1) // m) * m


_ALIGN = 16  # sublane alignment that is native-tile friendly for f32 and bf16


def _mlp_kernel(x_ref, slab_ref, out_ref, *, s_pad, L,
                o_w1, o_b1, o_w, o_b, o_w2, o_b2):
    f32 = jnp.float32
    x = x_ref[...].astype(f32)                                    # (TB, s_pad)

    # fc1 + relu
    w1 = slab_ref[pl.ds(o_w1, s_pad), :].astype(f32)              # (s_pad, L)
    b1 = slab_ref[pl.ds(o_b1, 1), :].astype(f32)                  # (1, L)
    h = jnp.maximum(jnp.dot(x, w1, preferred_element_type=f32) + b1, 0.0)

    # fc + relu   (padded lanes of h are exactly 0, padded weight rows are 0)
    w = slab_ref[pl.ds(o_w, L), :].astype(f32)                    # (L, L)
    b = slab_ref[pl.ds(o_b, 1), :].astype(f32)
    h = jnp.maximum(jnp.dot(h, w, preferred_element_type=f32) + b, 0.0)

    # fc2 (no activation); lane-dense (TB, L) store, cropped in the wrapper
    w2 = slab_ref[pl.ds(o_w2, L), :].astype(f32)                  # (L, L)
    b2 = slab_ref[pl.ds(o_b2, 1), :].astype(f32)
    out_ref[...] = (jnp.dot(h, w2, preferred_element_type=f32) + b2
                    ).astype(out_ref.dtype)


def init_params(key, state_size, hidden_size0, hidden_size1, output_size):
    """Mimics nn.Linear's U(-1/sqrt(fan_in), 1/sqrt(fan_in)) init.
    Weights stored as (in_features, out_features), biases as (1, out_features)."""
    ks = jax.random.split(key, 6)

    def lin(kw, kb, fan_in, fan_out):
        bound = 1.0 / jnp.sqrt(fan_in)
        w = jax.random.uniform(kw, (fan_in, fan_out), jnp.float32, -bound, bound)
        b = jax.random.uniform(kb, (1, fan_out), jnp.float32, -bound, bound)
        return w, b

    w1, b1 = lin(ks[0], ks[1], state_size, hidden_size0)
    w, b = lin(ks[2], ks[3], hidden_size0, hidden_size1)
    w2, b2 = lin(ks[4], ks[5], hidden_size1, output_size)
    return (w1, b1, w, b, w2, b2)


def pack_params(params, dtype=jnp.bfloat16):
    """Pack (w1,b1,w,b,w2,b2) into one zero-padded, 128-lane slab.

    Layout (rows, all segment starts are multiples of 16):
      [0,           s_pad)        : w1   (state_size rows used)
      [s_pad,       s_pad+16)     : b1   (row 0 used)
      [.. ,         ..+L)         : w    (hidden0 rows used)
      [..,          ..+16)        : b    (row 0 used)
      [..,          ..+L)         : w2   (hidden1 rows used)
      [..,          ..+16)        : b2   (row 0 used)
    Lane width L = round_up(max(hidden0, hidden1, output), 128).
    """
    w1, b1, w, b, w2, b2 = params
    S, H0 = w1.shape
    H1 = w.shape[1]
    O = w2.shape[1]

    L = _round_up(max(H0, H1, O), 128)
    s_pad = _round_up(S, _ALIGN)

    o_w1 = 0
    o_b1 = o_w1 + s_pad
    o_w = o_b1 + _ALIGN
    o_b = o_w + L
    o_w2 = o_b + _ALIGN
    o_b2 = o_w2 + L
    rows = o_b2 + _ALIGN

    slab = jnp.zeros((rows, L), dtype)
    slab = slab.at[o_w1:o_w1 + S, :H0].set(w1.astype(dtype))
    slab = slab.at[o_b1, :H0].set(b1.reshape(-1).astype(dtype))
    slab = slab.at[o_w:o_w + H0, :H1].set(w.astype(dtype))
    slab = slab.at[o_b, :H1].set(b.reshape(-1).astype(dtype))
    slab = slab.at[o_w2:o_w2 + H1, :O].set(w2.astype(dtype))
    slab = slab.at[o_b2, :O].set(b2.reshape(-1).astype(dtype))

    meta = dict(s_pad=s_pad, L=L, out_size=O,
                o_w1=o_w1, o_b1=o_b1, o_w=o_w, o_b=o_b, o_w2=o_w2, o_b2=o_b2)
    return slab, meta


def network_forward(state, slab, meta, *, batch_tile=256):
    """relu(fc1(state)) -> relu(fc(.)) -> fc2(.) as one fused Pallas kernel."""
    B, S = state.shape
    s_pad, L, O = meta["s_pad"], meta["L"], meta["out_size"]

    # 256 fills the 256-wide v6e/v7x MXU (128 already saturates v5e); shrink
    # the tile for tiny batches so we don't stream mostly-padding tiles.
    TB = min(batch_tile, _round_up(max(B, 1), 8))
    Bp = _round_up(B, TB)

    if (Bp, s_pad) != (B, S):
        x = jnp.zeros((Bp, s_pad), state.dtype).at[:B, :S].set(state)
    else:
        x = state

    kernel = functools.partial(
        _mlp_kernel, s_pad=s_pad, L=L,
        o_w1=meta["o_w1"], o_b1=meta["o_b1"], o_w=meta["o_w"],
        o_b=meta["o_b"], o_w2=meta["o_w2"], o_b2=meta["o_b2"])

    out = pl.pallas_call(
        kernel,
        out_shape=jax.ShapeDtypeStruct((Bp, L), jnp.float32),
        grid_spec=pltpu.PrefetchScalarGridSpec(
            num_scalar_prefetch=0,
            grid=(Bp // TB,),
            in_specs=[
                # batch tile streamed per grid step
                pl.BlockSpec((TB, s_pad), lambda i: (i, 0)),
                # whole parameter slab, constant block index -> DMA'd once,
                # stays VMEM-resident across all batch tiles
                pl.BlockSpec(slab.shape, lambda i: (0, 0)),
            ],
            out_specs=pl.BlockSpec((TB, L), lambda i: (i, 0)),
        ),
        compiler_params=pltpu.CompilerParams(
            # v7x: shard batch tiles across both TensorCores; no-op on v5e/v6e.
            dimension_semantics=("parallel",),
        ),
    )(x, slab)

    return out[:B, :O]


def ref_forward(state, params, weight_dtype=jnp.bfloat16):
    """Plain-JAX reference using the same bf16-rounded weights as the kernel."""
    w1, b1, w, b, w2, b2 = [
        p.astype(weight_dtype).astype(jnp.float32) for p in params
    ]
    h = jnp.maximum(state @ w1 + b1, 0.0)
    h = jnp.maximum(h @ w + b, 0.0)
    return h @ w2 + b2


if __name__ == "__main__":
    # Small, module-consistent shapes.
    batch = 2
    state_size = 16
    hidden_size0 = 32
    hidden_size1 = 32
    output_size = 8

    key = jax.random.PRNGKey(0)
    k_params, k_state, k_state_big = jax.random.split(key, 3)

    params = init_params(k_params, state_size, hidden_size0, hidden_size1,
                         output_size)
    slab, meta = pack_params(params, dtype=jnp.bfloat16)

    # --- small batch (spec shapes) ---
    state = jax.random.normal(k_state, (batch, state_size), jnp.float32)
    out = jax.block_until_ready(network_forward(state, slab, meta))
    ref = ref_forward(state, params)
    assert out.shape == (batch, output_size)
    # tolerance accounts for bf16 weight storage + TPU matmul precision modes
    assert jnp.allclose(out, ref, atol=1e-3, rtol=1e-3)

    # --- larger batch: exercises multi-tile grid + batch-padding path ---
    big_b = 300
    big_state = jax.random.normal(k_state_big, (big_b, state_size), jnp.float32)
    big_out = jax.block_until_ready(network_forward(big_state, slab, meta))
    big_ref = ref_forward(big_state, params)
    assert big_out.shape == (big_b, output_size)
    assert jnp.allclose(big_out, big_ref, atol=1e-3, rtol=1e-3)

    print("KERNEL_OK")
</pallas_src>

<mosaic_0001>
module attributes {stable_mosaic.version = 11 : i64} {
  func.func @_mlp_kernel(%arg0: i32, %arg1: memref<8x16xf32, #tpu.memory_space<vmem>>, %arg2: memref<320x128xbf16, #tpu.memory_space<vmem>>, %arg3: memref<8x128xf32, #tpu.memory_space<vmem>>) attributes {dimension_semantics = [#tpu.dimension_semantics<parallel>], iteration_bounds = array<i64: 1>, scalar_prefetch = 0 : i64, scratch_operands = 0 : i64, tpu.core_type = #tpu.core_type<tc>, window_params = [{transform_indices = @transform_0, window_bounds = array<i64: 8, 16>}, {pipeline_mode = #tpu.pipeline_mode<synchronous>, transform_indices = @transform_1, window_bounds = array<i64: 320, 128>}, {transform_indices = @transform_2, window_bounds = array<i64: 8, 128>}]} {
    %c0 = arith.constant 0 : index
    %c0_0 = arith.constant 0 : index
    %0 = vector.load %arg1[%c0, %c0_0] : memref<8x16xf32, #tpu.memory_space<vmem>>, vector<8x16xf32>
    %c0_1 = arith.constant 0 : index
    %c0_2 = arith.constant 0 : index
    %1 = vector.load %arg2[%c0_1, %c0_2] : memref<320x128xbf16, #tpu.memory_space<vmem>>, vector<16x128xbf16>
    %2 = arith.extf %1 : vector<16x128xbf16> to vector<16x128xf32>
    %c16 = arith.constant 16 : index
    %c0_3 = arith.constant 0 : index
    %3 = vector.load %arg2[%c16, %c0_3] : memref<320x128xbf16, #tpu.memory_space<vmem>>, vector<1x128xbf16>
    %4 = arith.extf %3 : vector<1x128xbf16> to vector<1x128xf32>
    %cst = arith.constant dense<0.000000e+00> : vector<8x128xf32>
    %5 = tpu.matmul %0, %2, %cst {dimension_numbers = #tpu.dot_dimension_numbers<[1], [0], [0], [1], [0, 0, 1, 1], [], []>} : vector<8x16xf32>, vector<16x128xf32>, vector<8x128xf32> -> vector<8x128xf32>
    %6 = vector.broadcast %4 : vector<1x128xf32> to vector<8x128xf32>
    %7 = arith.addf %5, %6 : vector<8x128xf32>
    %cst_4 = arith.constant 0.000000e+00 : f32
    %8 = vector.broadcast %cst_4 : f32 to vector<8x128xf32>
    %9 = arith.maximumf %7, %8 : vector<8x128xf32>
    %c32 = arith.constant 32 : index
    %c0_5 = arith.constant 0 : index
    %10 = vector.load %arg2[%c32, %c0_5] : memref<320x128xbf16, #tpu.memory_space<vmem>>, vector<128x128xbf16>
    %11 = arith.extf %10 : vector<128x128xbf16> to vector<128x128xf32>
    %c160 = arith.constant 160 : index
    %c0_6 = arith.constant 0 : index
    %12 = vector.load %arg2[%c160, %c0_6] : memref<320x128xbf16, #tpu.memory_space<vmem>>, vector<1x128xbf16>
    %13 = arith.extf %12 : vector<1x128xbf16> to vector<1x128xf32>
    %cst_7 = arith.constant dense<0.000000e+00> : vector<8x128xf32>
    %14 = tpu.matmul %9, %11, %cst_7 {dimension_numbers = #tpu.dot_dimension_numbers<[1], [0], [0], [1], [0, 0, 1, 1], [], []>} : vector<8x128xf32>, vector<128x128xf32>, vector<8x128xf32> -> vector<8x128xf32>
    %15 = vector.broadcast %13 : vector<1x128xf32> to vector<8x128xf32>
    %16 = arith.addf %14, %15 : vector<8x128xf32>
    %cst_8 = arith.constant 0.000000e+00 : f32
    %17 = vector.broadcast %cst_8 : f32 to vector<8x128xf32>
    %18 = arith.maximumf %16, %17 : vector<8x128xf32>
    %c176 = arith.constant 176 : index
    %c0_9 = arith.constant 0 : index
    %19 = vector.load %arg2[%c176, %c0_9] : memref<320x128xbf16, #tpu.memory_space<vmem>>, vector<128x128xbf16>
    %20 = arith.extf %19 : vector<128x128xbf16> to vector<128x128xf32>
    %c304 = arith.constant 304 : index
    %c0_10 = arith.constant 0 : index
    %21 = vector.load %arg2[%c304, %c0_10] : memref<320x128xbf16, #tpu.memory_space<vmem>>, vector<1x128xbf16>
    %22 = arith.extf %21 : vector<1x128xbf16> to vector<1x128xf32>
    %cst_11 = arith.constant dense<0.000000e+00> : vector<8x128xf32>
    %23 = tpu.matmul %18, %20, %cst_11 {dimension_numbers = #tpu.dot_dimension_numbers<[1], [0], [0], [1], [0, 0, 1, 1], [], []>} : vector<8x128xf32>, vector<128x128xf32>, vector<8x128xf32> -> vector<8x128xf32>
    %24 = vector.broadcast %22 : vector<1x128xf32> to vector<8x128xf32>
    %25 = arith.addf %23, %24 : vector<8x128xf32>
    %c0_12 = arith.constant 0 : index
    %c0_13 = arith.constant 0 : index
    %26 = vector.load %arg3[%c0_12, %c0_13] : memref<8x128xf32, #tpu.memory_space<vmem>>, vector<8x128xf32>
    tpu.vector_store %arg3[%c0_12, %c0_13], %25 {strides = array<i32>} : memref<8x128xf32, #tpu.memory_space<vmem>>, vector<8x128xf32>,
    return
  }
  func.func @transform_0(%arg0: i32) -> (i32, i32) {
    %c0_i32 = arith.constant 0 : i32
    %c0_i32_0 = arith.constant 0 : i32
    return %arg0, %c0_i32 : i32, i32
  }
  func.func @transform_1(%arg0: i32) -> (i32, i32) {
    %c0_i32 = arith.constant 0 : i32
    %c0_i32_0 = arith.constant 0 : i32
    %c0_i32_1 = arith.constant 0 : i32
    return %c0_i32, %c0_i32_0 : i32, i32
  }
  func.func @transform_2(%arg0: i32) -> (i32, i32) {
    %c0_i32 = arith.constant 0 : i32
    %c0_i32_0 = arith.constant 0 : i32
    return %arg0, %c0_i32 : i32, i32
  }
}

</mosaic_0001>

<bundles_post_ra>
// kernel: tpu_custom_call.1
= control target key start
LH: loop header
LB: loop body
LE: loop exit
PB: predicated region body
PF: predicated region fallthrough
CT: control target
= control target key end

     0   :  { %7 = vsyncpa [#allocation3], 0  ;;  %s757_s0 = inlined_call_operand.hbm [shape: f32[8,16], index: 0, kind: input, shape index: {}]   ;;  %s758_s1 = inlined_call_operand.hbm [shape: bf16[320,128], index: 1, kind: input, shape index: {}]   ;;  %s759_s2 = inlined_call_operand.hbm [shape: f32[8,128], index: 2, kind: output, shape index: {}]  }
   0x1   :  { %8 = vsyncpa [#allocation6], 0 }
   0x2   :  { %9 = vsyncpa [#allocation4], 0  ;;  %s688_s9 = smov [#allocation2]   ;;  %s689_s11 = smov [#allocation5]  }
   0x3   :  { %s16_s10 = sshll.u32 %s688_s9, 4  ;;  %s25_s12 = sshll.u32 %s689_s11, 4  ;;  %s17_s10 = int_to_ptr.vmem [resolvable:$true] %s16_s10  ;;  %s711_s12 = int_to_ptr.vmem [resolvable:$true] %s25_s12 }
   0x4   :  { %s616_s15 = scalar_lea.hbm %s757_s0, 128 }
   0x5   :  { %p617_p0 = scmp.ne.s32.totalorder %s757_s0, %s616_s15  ;;  %p620_p1 = scmp.lt.u32.totalorder %s616_s15, %s757_s0 }
   0x7   :  { %p622_p2 = pnand %p620_p1, %p617_p0 }
   0x9   :  { %625 = shalt.err (!%p622_p2)
}
   0xa   :  { %s626_s20 = scalar_lea.vmem %s17_s10, 128  ;;  %p631_p4 = scmp.lt.s32.totalorder %s17_s10, %s17_s10 }
   0xb   :  { %p627_p3 = scmp.ne.s32.totalorder %s17_s10, %s626_s20  ;;  %p632_p5 = scmp.lt.s32.totalorder %s626_s20, %s626_s20 }
   0xd   :  { %p633_p6 = por %p632_p5, %p631_p4 }
   0xf   :  { %p634_p7 = pnand %p633_p6, %p627_p3 }
  0x11   :  { %637 = shalt.err (!%p634_p7)
}
  0x12   :  { %19 = dma.hbm_to_vmem [thread:$0]  %s757_s0, 128, %s17_s10, [#allocation3]  }
  0x13   :  { %s638_s25 = scalar_lea.hbm %s758_s1, 2560 }
  0x14   :  { %p639_p8 = scmp.ne.s32.totalorder %s758_s1, %s638_s25  ;;  %p642_p9 = scmp.lt.u32.totalorder %s638_s25, %s758_s1 }
  0x16   :  { %p644_p10 = pnand %p642_p9, %p639_p8 }
  0x18   :  { %647 = shalt.err (!%p644_p10)
}
  0x19   :  { %s648_s30 = scalar_lea.vmem %s711_s12, 2560  ;;  %p653_p12 = scmp.lt.s32.totalorder %s711_s12, %s711_s12 }
  0x1a   :  { %p649_p11 = scmp.ne.s32.totalorder %s711_s12, %s648_s30  ;;  %p654_p13 = scmp.lt.s32.totalorder %s648_s30, %s648_s30 }
  0x1c   :  { %p655_p0 = por %p654_p13, %p653_p12 }
  0x1e   :  { %p656_p1 = pnand %p655_p0, %p649_p11 }
  0x20   :  { %659 = shalt.err (!%p656_p1)
}
  0x21   :  { %s690_s0 = smov 64   ;;  %s691_s3 = smov 4  }
  0x22   :  { %31 = dma.hbm_to_vmem [thread:$0]  %s758_s1, 2560, %s711_s12, [#allocation6], %s690_s0, %s690_s0, %s691_s3  }
  0x23   :  { %682 = dma.done.wait [#allocation3], 128  }
  0x24   :  { %683 = vsyncadd [#allocation3], 4294967168 }
  0x25   :  { %684 = dma.done.wait [#allocation6], 2560  }
  0x26   :  { %685 = vsyncadd [#allocation6], 4294964736  ;;  %v692_v0 = vmov 0.0|0.0   ;;  %vm693_vm0 = vmmov 0   ;;  %v694_v1 = vmov 0.0   ;;  %v360_v2 = vld [vmem:[#allocation5] sm:$0xff]   ;;  %v45_v19 = vlaneseq }
  0x27   :  { %557 = vmatprep.subr.bf16.mxu0 %v692_v0  ;;  %484 = vmatprep.mubr.msk.f32.mxu0 %vm693_vm0, %v694_v1  ;;  %v427_v3 = vld [vmem:[#allocation5 + $0x10] sm:$0xff]   ;;  %v38_v4 = vld [vmem:[#allocation2] sm:$0xff]  ;;  %vm49_vm1 = vcmask 130048   ;;  %v429_v6 = vld [vmem:[#allocation5 + $0x20] sm:$0xff]   ;;  %s695_s1 = smov [#allocation7]  }
  0x28   :  { %560 = vmatprep.subr.bf16.mxu1 %v692_v0  ;;  %519 = vmatprep.mubr.msk.f32.mxu1 %vm693_vm0, %v694_v1  ;;  %v428_v5 = vld [vmem:[#allocation5 + $0x18] sm:$0xff]   ;;  %v430_v7 = vld [vmem:[#allocation5 + $0x28] sm:$0xff]   ;;  %v431_v8 = vld [vmem:[#allocation5 + $0x30] sm:$0xff]   ;;  %v46_v20 = vshrl.u32 %v45_v19, 7  ;;  %s348_s6 = sshll.u32 %s695_s1, 4  ;;  %s349_s6 = int_to_ptr.vmem [resolvable:$true] %s348_s6 }
  0x29   :  { %559 = vmatpush3.bf16.msra.mxu0 %v360_v2  ;;  %562 = vmatpush3.bf16.msra.mxu1 %v427_v3  ;;  %v432_v9 = vld [vmem:[#allocation5 + $0x38] sm:$0xff]   ;;  %v433_v10 = vld [vmem:[#allocation5 + $0x40] sm:$0xff]   ;;  %v434_v11 = vld [vmem:[#allocation5 + $0x48] sm:$0xff]   ;;  %s660_s7 = scalar_lea.vmem %s349_s6, 128  ;;  %p665_p3 = scmp.lt.s32.totalorder %s349_s6, %s349_s6 }
  0x2a   :  { %563 = vmatprep.subr.bf16.mxu1 %v692_v0  ;;  %584 = vmatprep.subr.bf16.mxu0 %v692_v0  ;;  %v435_v12 = vld [vmem:[#allocation5 + $0x58] sm:$0xff]   ;;  %v436_v13 = vld [vmem:[#allocation5 + $0x60] sm:$0xff]   ;;  %v437_v14 = vld [vmem:[#allocation5 + $0x68] sm:$0xff]   ;;  %v47_v23 = vsub.s32 0, %v46_v20  ;;  %p661_p2 = scmp.ne.s32.totalorder %s349_s6, %s660_s7  ;;  %p666_p4 = scmp.lt.s32.totalorder %s660_s7, %s660_s7 }
  0x2b   :  { %v438_v15 = vld [vmem:[#allocation5 + $0x70] sm:$0xff]   ;;  %v439_v16 = vld [vmem:[#allocation5 + $0x78] sm:$0xff]   ;;  %v440_v17 = vld [vmem:[#allocation5 + $0x80] sm:$0xff]  }
  0x2c   :  { %485 = vmatmul.mubr.msk.f32.vlgmr.msra.gmra.mrb[0].mxu0 %vm49_vm1, %v38_v4  ;;  %v441_v18 = vld [vmem:[#allocation5 + $0x88] sm:$0xff]   ;;  %v442_v29 = vld [vmem:[#allocation5 + $0x90] sm:$0xff]   ;;  %v265_v37 = vld [vmem:[#allocation5 + $0x98] sm:$0x1]  ;;  %p667_p5 = por %p666_p4, %p665_p3 }
  0x2d   :  { %565 = vmatpush3.bf16.msra.mxu1 %v428_v5  ;;  %554 = vmatprep.mubr.msk.f32.mxu0 %vm693_vm0, %v694_v1  ;;  %v43_v21 = vld [vmem:[#allocation5 + $0x8] sm:$0x1]  ;;  %v156_v30 = vld [vmem:[#allocation5 + $0x50] sm:$0x1]  ;;  %v266_v38 = vunpack.c.l.bf16 %v265_v37 }
  0x2e   :  { %566 = vmatprep.subr.bf16.mxu1 %v692_v0  ;;  %586 = vmatpush3.bf16.msra.mxu0 %v435_v12  ;;  %v44_v22 = vunpack.c.l.bf16 %v43_v21  ;;  %v157_v31 = vunpack.c.l.bf16 %v156_v30  ;;  %p668_p6 = pnand %p667_p5, %p661_p2 }
  0x2f   :  { %587 = vmatprep.subr.bf16.mxu0 %v692_v0  ;;  %v270_v39 = vrot.slane %v266_v38, %v47_v23 }
  0x30   :  { %v48_v24 = vrot.slane %v44_v22, %v47_v23  ;;  %v161_v32 = vrot.slane %v157_v31, %v47_v23 }
  0x31   :  { %568 = vmatpush3.bf16.msra.mxu1 %v429_v6 }
  0x32   :  { %569 = vmatprep.subr.bf16.mxu1 %v692_v0  ;;  %589 = vmatpush3.bf16.msra.mxu0 %v436_v13 }
  0x33   :  { %590 = vmatprep.subr.bf16.mxu0 %v692_v0 }
  0x35   :  { %571 = vmatpush3.bf16.msra.mxu1 %v430_v7 }
  0x36   :  { %572 = vmatprep.subr.bf16.mxu1 %v692_v0  ;;  %592 = vmatpush3.bf16.msra.mxu0 %v437_v14 }
  0x37   :  { %593 = vmatprep.subr.bf16.mxu0 %v692_v0 }
  0x39   :  { %574 = vmatpush3.bf16.msra.mxu1 %v431_v8 }
  0x3a   :  { %575 = vmatprep.subr.bf16.mxu1 %v692_v0  ;;  %595 = vmatpush3.bf16.msra.mxu0 %v438_v15 }
  0x3b   :  { %596 = vmatprep.subr.bf16.mxu0 %v692_v0 }
  0x3d   :  { %577 = vmatpush3.bf16.msra.mxu1 %v432_v9 }
  0x3e   :  { %578 = vmatprep.subr.bf16.mxu1 %v692_v0  ;;  %598 = vmatpush3.bf16.msra.mxu0 %v439_v16 }
  0x3f   :  { %599 = vmatprep.subr.bf16.mxu0 %v692_v0 }
  0x41   :  { %580 = vmatpush3.bf16.msra.mxu1 %v433_v10 }
  0x42   :  { %581 = vmatprep.subr.bf16.mxu1 %v692_v0  ;;  %601 = vmatpush3.bf16.msra.mxu0 %v440_v17 }
  0x43   :  { %602 = vmatprep.subr.bf16.mxu0 %v692_v0 }
  0x45   :  { %583 = vmatpush3.bf16.msra.mxu1 %v434_v11 }
  0x46   :  { %604 = vmatpush3.bf16.msra.mxu0 %v441_v18 }
  0x47   :  { %605 = vmatprep.subr.bf16.mxu0 %v692_v0 }
  0x4a   :  { %607 = vmatpush3.bf16.msra.mxu0 %v442_v29 }
  0xff   :  { %v119_v25 = vpop.f32.mrb[0].mxu0 }
 0x100   :  { %v120_v26 = vadd.f32 %v119_v25, %v48_v24  ;;  %v486_v27 = vpop.f32.mrb[1].mxu0 }
 0x102   :  { %v123_v28 = vmax.f32 %v120_v26, 0.0 }
 0x104   :  { %520 = vmatmul.mubr.f32.vlgmr.msra.gmra.mrb[0].mxu1 %v123_v28 }
 0x1d7   :  { %v228_v33 = vpop.f32.mrb[0].mxu1 }
 0x1d8   :  { %v229_v34 = vadd.f32 %v228_v33, %v161_v32  ;;  %v521_v35 = vpop.f32.mrb[1].mxu1 }
 0x1da   :  { %v232_v36 = vmax.f32 %v229_v34, 0.0 }
 0x1dc   :  { %555 = vmatmul.mubr.f32.vlgmr.msra.gmra.mrb[2].mxu0 %v232_v36 }
 0x2af   :  { %v337_v40 = vpop.f32.mrb[2].mxu0 }
 0x2b0   :  { %v338_v41 = vadd.f32 %v337_v40, %v270_v39  ;;  %v556_v42 = vpop.f32.mrb[3].mxu0 }
 0x2b2   :  { %341 = vst [vmem:[#allocation7] sm:$0xff] %v338_v41 }
 0x2b3   :  { %671 = shalt.err (!%p668_p6)
}
 0x2b4   :  { %s672_s10 = scalar_lea.hbm %s759_s2, 128 }
 0x2b5   :  { %p673_p7 = scmp.ne.s32.totalorder %s759_s2, %s672_s10  ;;  %p676_p8 = scmp.lt.u32.totalorder %s672_s10, %s759_s2 }
 0x2b7   :  { %p678_p9 = pnand %p676_p8, %p673_p7 }
 0x2b9   :  { %681 = shalt.err (!%p678_p9)
}
 0x2ba   :  { %351 = dma.vmem_to_hbm [thread:$0]  %s349_s6, 128, %s759_s2, [#allocation4]  }
 0x2bb   :  { %686 = dma.done.wait [#allocation4], 128  }
 0x2bc   :  { %687 = vsyncadd [#allocation4], 4294967168 }
 0x2bd   :  { %355 = vsyncpa [#allocation3], 1 }
 0x2be   :  { %356 = vsyncpa [#allocation6], 1 }
 0x2bf   :  { %357 = vsyncpa [#allocation4], 1 }

</bundles_post_ra>
